<compile_context>
chip_gen: v5e
topology: v5e:2x2
jax: 0.10.0
libtpu: 0.0.40
codegen_flags: <defaults>
</compile_context>

<pallas_src>
import jax
import jax.numpy as jnp
from jax import lax
from jax.experimental import pallas as pl
from jax.experimental.pallas import tpu as pltpu

_LANE = 128
_CHUNK_TILES = 8          # tiles processed per inner-loop step (bounded live range)


def _sublanes_for(dtype):
    """Native sublane count per vreg tile: f32->8, bf16/f16->16, int8/fp8->32."""
    return 32 // jnp.dtype(dtype).itemsize


def _device_config():
    """Per-generation block size / VMEM limit (v5e / v6e / v7x)."""
    try:
        kind = jax.devices()[0].device_kind.lower()
    except Exception:
        kind = ""
    if "v6" in kind:
        # v6e: 128 MiB VMEM, ~1.35 TB/s -> 8 MiB blocks amortize the ~0.35us step cost.
        return dict(block_bytes=8 << 20, vmem_limit=64 << 20, min_blocks=1)
    if "v7" in kind or "7x" in kind:
        # v7x: 64 MiB VMEM/TC, 2 TCs -> 4 MiB blocks, keep >=4 blocks for megacore sharding.
        return dict(block_bytes=4 << 20, vmem_limit=40 << 20, min_blocks=4)
    # v5e / unknown: 2 MiB blocks; keep the explicit 32 MiB limit (default scoped is 16 MiB).
    return dict(block_bytes=2 << 20, vmem_limit=32 << 20, min_blocks=1)


def _make_kl_partial_kernel(block_tiles, chunk_tiles, total_tiles):
    """Kernel producing one (sub, 128) partial sum per grid block."""
    num_chunks = block_tiles // chunk_tiles

    def kernel(x_ref, t_ref, out_ref):
        # x_ref/t_ref: (block_tiles, sub, 128) blocks of log-probs / target probs
        # out_ref:     (1, sub, 128) f32 partial sums for this block
        block_base = pl.program_id(0) * block_tiles

        def chunk_sum(c, acc):
            start = pl.multiple_of(c * chunk_tiles, chunk_tiles)
            x = x_ref[pl.ds(start, chunk_tiles)].astype(jnp.float32)
            t = t_ref[pl.ds(start, chunk_tiles)].astype(jnp.float32)

            # pointwise = t * (log t - x); t == 0 -> 0 (torch xlogy convention),
            # t < 0 -> NaN (matches torch for malformed targets).
            safe_t = jnp.where(t == 0.0, 1.0, t)
            pw = t * (jnp.log(safe_t) - x)

            # Mask tiles that lie past the end of the real array (only the last
            # grid block can be ragged; its OOB region holds garbage VMEM data).
            tile_id = block_base + start + lax.broadcasted_iota(
                jnp.int32, (chunk_tiles, 1, _LANE), 0)
            pw = jnp.where(tile_id < total_tiles, pw, 0.0)

            # Leading-axis reduction: pure VALU vreg adds, no XLU.
            return acc + jnp.sum(pw, axis=0)

        acc0 = jnp.zeros(x_ref.shape[1:], jnp.float32)
        acc = lax.fori_loop(0, num_chunks, chunk_sum, acc0,
                            unroll=True if num_chunks <= 8 else 4)
        out_ref[0] = acc

    return kernel


def multi_choice_cross_entropy_loss(logits, target_distribution, *, block_tiles=None):
    """KLDivLoss(reduction='mean') computed with a Pallas TPU kernel.

    logits:              log-probabilities (any shape)
    target_distribution: probabilities (same shape)
    returns: scalar f32
    """
    assert logits.shape == target_distribution.shape
    n_elems = int(logits.size)
    assert n_elems > 0

    # TPU-friendly dtypes only; keep narrow (bf16) inputs narrow in HBM.
    if jnp.dtype(logits.dtype).itemsize > 4:
        logits = logits.astype(jnp.float32)
    if target_distribution.dtype != logits.dtype:
        target_distribution = target_distribution.astype(logits.dtype)

    dtype = logits.dtype
    itemsize = jnp.dtype(dtype).itemsize
    sub = _sublanes_for(dtype)
    tile_elems = sub * _LANE

    total_tiles = n_elems // tile_elems
    n_main = total_tiles * tile_elems

    x_flat = logits.reshape(-1)                 # free row-major bitcast
    t_flat = target_distribution.reshape(-1)

    total = jnp.float32(0.0)

    if total_tiles > 0:
        cfg = _device_config()
        if block_tiles is None:
            block_tiles = max(1, cfg["block_bytes"] // (tile_elems * itemsize))
            # Keep >= min_blocks grid steps so the "parallel" axis can shard
            # across both v7x TensorCores.
            block_tiles = min(block_tiles,
                              max(1, pl.cdiv(total_tiles, cfg["min_blocks"])))
        block_tiles = min(block_tiles, total_tiles)
        chunk_tiles = min(_CHUNK_TILES, block_tiles)
        block_tiles = max(chunk_tiles, (block_tiles // chunk_tiles) * chunk_tiles)
        num_blocks = pl.cdiv(total_tiles, block_tiles)

        if n_main == n_elems:
            # Zero-copy path: contiguous reshape is a bitcast.
            x3 = x_flat.reshape(total_tiles, sub, _LANE)
            t3 = t_flat.reshape(total_tiles, sub, _LANE)
        else:
            # Largest tile-aligned contiguous prefix; the < tile_elems leftover
            # is reduced with plain jnp below (no full-array jnp.pad).
            x3 = x_flat[:n_main].reshape(total_tiles, sub, _LANE)
            t3 = t_flat[:n_main].reshape(total_tiles, sub, _LANE)

        kernel = _make_kl_partial_kernel(block_tiles, chunk_tiles, total_tiles)

        cost = pl.CostEstimate(
            flops=5 * n_main,
            transcendentals=n_main,
            bytes_accessed=2 * n_main * itemsize + num_blocks * sub * _LANE * 4,
        )

        partials = pl.pallas_call(
            kernel,
            out_shape=jax.ShapeDtypeStruct((num_blocks, sub, _LANE), jnp.float32),
            grid_spec=pltpu.PrefetchScalarGridSpec(
                num_scalar_prefetch=0,
                grid=(num_blocks,),
                in_specs=[
                    pl.BlockSpec((block_tiles, sub, _LANE), lambda i: (i, 0, 0)),
                    pl.BlockSpec((block_tiles, sub, _LANE), lambda i: (i, 0, 0)),
                ],
                out_specs=pl.BlockSpec((1, sub, _LANE), lambda i: (i, 0, 0)),
            ),
            compiler_params=pltpu.CompilerParams(
                dimension_semantics=("parallel",),     # independent blocks
                vmem_limit_bytes=cfg["vmem_limit"],
            ),
            cost_estimate=cost,
        )(x3, t3)
        total = jnp.sum(partials)

    if n_main < n_elems:
        # Tiny ragged tail (< one (sub,128) tile): plain jnp, negligible cost.
        xt = x_flat[n_main:].astype(jnp.float32)
        tt = t_flat[n_main:].astype(jnp.float32)
        total = total + jnp.sum(tt * (jnp.log(jnp.where(tt == 0.0, 1.0, tt)) - xt))

    # reduction='mean' -> divide by the ORIGINAL element count.
    return total / jnp.float32(n_elems)


def _reference(logits, target):
    t = target.astype(jnp.float32)
    x = logits.astype(jnp.float32)
    pw = t * (jnp.log(jnp.where(t == 0.0, 1.0, t)) - x)
    return jnp.mean(pw)


if __name__ == "__main__":
    key = jax.random.PRNGKey(0)

    def check(B, N, dtype, block_tiles=None, tol=1e-5):
        k1, k2 = jax.random.split(jax.random.fold_in(key, B * 100003 + N))
        logits = jax.nn.log_softmax(
            jax.random.normal(k1, (B, N), jnp.float32), axis=-1).astype(dtype)
        target = jax.nn.softmax(
            jax.random.normal(k2, (B, N), jnp.float32), axis=-1).astype(dtype)
        loss = multi_choice_cross_entropy_loss(logits, target, block_tiles=block_tiles)
        loss = jax.block_until_ready(loss)
        ref = _reference(logits, target)
        assert jnp.allclose(loss, ref, rtol=tol, atol=tol), (B, N, str(dtype), loss, ref)

    # ragged element tail: 64*130 = 8 full (8,128) tiles + 128 leftover elems
    check(64, 130, jnp.float32)
    # perfectly tile-aligned -> zero-copy reshape path
    check(8, 1024, jnp.float32)
    # multi-block grid with a ragged last block (exercises in-kernel tile masking)
    check(8, 1300, jnp.float32, block_tiles=4)
    # bf16 inputs: 16-sublane packed tiles, per-chunk upcast inside the kernel
    check(16, 512, jnp.bfloat16, tol=1e-3)

    print("KERNEL_OK")
</pallas_src>

<mosaic_0001>
module attributes {stable_mosaic.version = 11 : i64} {
  func.func @kernel(%arg0: i32, %arg1: memref<8x8x128xf32, #tpu.memory_space<vmem>>, %arg2: memref<8x8x128xf32, #tpu.memory_space<vmem>>, %arg3: memref<1x8x128xf32, #tpu.memory_space<vmem>>) attributes {dimension_semantics = [#tpu.dimension_semantics<parallel>], iteration_bounds = array<i64: 1>, scalar_prefetch = 0 : i64, scratch_operands = 0 : i64, tpu.core_type = #tpu.core_type<tc>, window_params = [{transform_indices = @transform_0, window_bounds = array<i64: 8, 8, 128>}, {transform_indices = @transform_1, window_bounds = array<i64: 8, 8, 128>}, {transform_indices = @transform_2, window_bounds = array<i64: 1, 8, 128>}]} {
    %c8_i32 = arith.constant 8 : i32
    %0 = arith.muli %arg0, %c8_i32 : i32
    %cst = arith.constant 0.000000e+00 : f32
    %1 = vector.broadcast %cst : f32 to vector<8x128xf32>
    %c0_i32 = arith.constant 0 : i32
    %c8_i32_0 = arith.constant 8 : i32
    %2 = arith.muli %c0_i32, %c8_i32_0 : i32
    %3 = tpu.assume_multiple %2, 8 : i32
    %4 = arith.index_cast %3 : i32 to index
    %c0 = arith.constant 0 : index
    %c0_1 = arith.constant 0 : index
    %5 = vector.load %arg1[%4, %c0, %c0_1] : memref<8x8x128xf32, #tpu.memory_space<vmem>>, vector<8x8x128xf32>
    %6 = arith.index_cast %3 : i32 to index
    %c0_2 = arith.constant 0 : index
    %c0_3 = arith.constant 0 : index
    %7 = vector.load %arg2[%6, %c0_2, %c0_3] : memref<8x8x128xf32, #tpu.memory_space<vmem>>, vector<8x8x128xf32>
    %cst_4 = arith.constant 0.000000e+00 : f32
    %8 = vector.broadcast %cst_4 : f32 to vector<8x8x128xf32>
    %9 = arith.cmpf oeq, %7, %8 : vector<8x8x128xf32>
    %cst_5 = arith.constant 1.000000e+00 : f32
    %10 = vector.broadcast %cst_5 : f32 to vector<8x8x128xf32>
    %11 = arith.select %9, %10, %7 : vector<8x8x128xi1>, vector<8x8x128xf32>
    %12 = math.log %11 : vector<8x8x128xf32>
    %13 = arith.subf %12, %5 : vector<8x8x128xf32>
    %14 = arith.mulf %7, %13 : vector<8x8x128xf32>
    %15 = arith.addi %0, %3 : i32
    %16 = tpu.iota {dimensions = array<i32: 0>} : vector<8x1x128xi32>
    %17 = vector.broadcast %15 : i32 to vector<8x1x128xi32>
    %18 = arith.addi %17, %16 : vector<8x1x128xi32>
    %c8_i32_6 = arith.constant 8 : i32
    %19 = vector.broadcast %c8_i32_6 : i32 to vector<8x1x128xi32>
    %20 = arith.cmpi slt, %18, %19 : vector<8x1x128xi32>
    %cst_7 = arith.constant 0.000000e+00 : f32
    %21 = vector.shape_cast %20 : vector<8x1x128xi1> to vector<8x1x128xi1>
    %22 = vector.broadcast %21 : vector<8x1x128xi1> to vector<8x8x128xi1>
    %23 = vector.broadcast %cst_7 : f32 to vector<8x8x128xf32>
    %24 = arith.select %22, %14, %23 : vector<8x8x128xi1>, vector<8x8x128xf32>
    %cst_8 = arith.constant dense<0.000000e+00> : vector<8x128xf32>
    %25 = vector.multi_reduction <add>, %24, %cst_8 [0] : vector<8x8x128xf32> to vector<8x128xf32>
    %26 = arith.addf %1, %25 : vector<8x128xf32>
    %c1_i32 = arith.constant 1 : i32
    %c0_9 = arith.constant 0 : index
    %c0_10 = arith.constant 0 : index
    %c0_11 = arith.constant 0 : index
    %27 = vector.load %arg3[%c0_9, %c0_10, %c0_11] : memref<1x8x128xf32, #tpu.memory_space<vmem>>, vector<1x8x128xf32>
    %28 = vector.shape_cast %27 : vector<1x8x128xf32> to vector<8x128xf32>
    %29 = vector.shape_cast %26 : vector<8x128xf32> to vector<1x8x128xf32>
    tpu.vector_store %arg3[%c0_9, %c0_10, %c0_11], %29 {strides = array<i32>} : memref<1x8x128xf32, #tpu.memory_space<vmem>>, vector<1x8x128xf32>,
    return
  }
  func.func @transform_0(%arg0: i32) -> (i32, i32, i32) {
    %c0_i32 = arith.constant 0 : i32
    %c0_i32_0 = arith.constant 0 : i32
    %c0_i32_1 = arith.constant 0 : i32
    return %arg0, %c0_i32, %c0_i32_0 : i32, i32, i32
  }
  func.func @transform_1(%arg0: i32) -> (i32, i32, i32) {
    %c0_i32 = arith.constant 0 : i32
    %c0_i32_0 = arith.constant 0 : i32
    %c0_i32_1 = arith.constant 0 : i32
    return %arg0, %c0_i32, %c0_i32_0 : i32, i32, i32
  }
  func.func @transform_2(%arg0: i32) -> (i32, i32, i32) {
    %c0_i32 = arith.constant 0 : i32
    %c0_i32_0 = arith.constant 0 : i32
    %c0_i32_1 = arith.constant 0 : i32
    return %arg0, %c0_i32, %c0_i32_0 : i32, i32, i32
  }
}

</mosaic_0001>

<bundles_post_ra>
// kernel: tpu_custom_call.1
= control target key start
LH: loop header
LB: loop body
LE: loop exit
PB: predicated region body
PF: predicated region fallthrough
CT: control target
= control target key end

     0   :  { %7 = vsyncpa [#allocation3], 0  ;;  %s328_s0 = inlined_call_operand.hbm [shape: f32[8,8,128], index: 0, kind: input, shape index: {}]   ;;  %s329_s1 = inlined_call_operand.hbm [shape: f32[8,8,128], index: 1, kind: input, shape index: {}]   ;;  %s330_s2 = inlined_call_operand.hbm [shape: f32[1,8,128], index: 2, kind: output, shape index: {}]  }
   0x1   :  { %8 = vsyncpa [#allocation6], 0 }
   0x2   :  { %9 = vsyncpa [#allocation4], 0  ;;  %s14_s11 = sshll.u32 %s328_s0, 4  ;;  %s279_s12 = smov [#allocation2]   ;;  %s15_s11 = int_to_ptr.hbm [resolvable:$true] %s14_s11 }
   0x3   :  { %s16_s13 = sshll.u32 %s279_s12, 4  ;;  %s27_s16 = sshll.u32 %s329_s1, 4  ;;  %s17_s13 = int_to_ptr.vmem [resolvable:$true] %s16_s13  ;;  %s28_s16 = int_to_ptr.hbm [resolvable:$true] %s27_s16 }
   0x4   :  { %s280_s17 = smov 128   ;;  %s281_s18 = smov 8  }
   0x5   :  { %22 = dma.hbm_to_vmem [thread:$0]  %s15_s11, 1024, %s17_s13, [#allocation3], %s280_s17, %s280_s17, %s281_s18  }
   0x6   :  { %s282_s19 = smov [#allocation5]  }
   0x7   :  { %s29_s20 = sshll.u32 %s282_s19, 4  ;;  %s30_s20 = int_to_ptr.vmem [resolvable:$true] %s29_s20 }
   0x8   :  { %35 = dma.hbm_to_vmem [thread:$0]  %s28_s16, 1024, %s30_s20, [#allocation6], %s280_s17, %s280_s17, %s281_s18  }
   0x9   :  { %273 = dma.done.wait [#allocation3], 1024  }
   0xa   :  { %274 = vsyncadd [#allocation3], 4294966272 }
   0xb   :  { %275 = dma.done.wait [#allocation6], 1024  }
   0xc   :  { %276 = vsyncadd [#allocation6], 4294966272  ;;  %v56_v0 = vld [vmem:[#allocation5] sm:$0xff]  ;;  %v57_v1 = vld [vmem:[#allocation5 + $0x8] sm:$0xff]  ;;  %s283_s0 = smov [#allocation7]   ;;  %s169_s23 = sshll.u32 %s330_s2, 4  ;;  %s170_s23 = int_to_ptr.hbm [resolvable:$true] %s169_s23 }
   0xd   :  { %v58_v2 = vld [vmem:[#allocation5 + $0x10] sm:$0xff]  ;;  %v59_v3 = vld [vmem:[#allocation5 + $0x18] sm:$0xff]  ;;  %vm64_vm0 = vcmp.eq.f32.partialorder %v56_v0, 0.0  ;;  %v305_v4 = vld [vmem:[#allocation5 + $0x20] sm:$0xff]  ;;  %vm65_vm1 = vcmp.eq.f32.partialorder %v57_v1, 0.0  ;;  %s167_s1 = sshll.u32 %s283_s0, 4  ;;  %s168_s1 = int_to_ptr.vmem [resolvable:$true] %s167_s1 }
   0xe   :  { %v307_v5 = vld [vmem:[#allocation5 + $0x28] sm:$0xff]  ;;  %vm66_vm2 = vcmp.eq.f32.partialorder %v58_v2, 0.0  ;;  %v309_v6 = vld [vmem:[#allocation5 + $0x30] sm:$0xff]  ;;  %vm67_vm3 = vcmp.eq.f32.partialorder %v59_v3, 0.0  ;;  %v72_v7 = vsel %vm64_vm0, 1.0, %v56_v0  ;;  %v311_v8 = vld [vmem:[#allocation5 + $0x38] sm:$0xff] }
   0xf   :  { %vm68_vm4 = vcmp.eq.f32.partialorder %v305_v4, 0.0  ;;  %v73_v9 = vsel %vm65_vm1, 1.0, %v57_v1  ;;  %vm69_vm5 = vcmp.eq.f32.partialorder %v307_v5, 0.0  ;;  %v74_v10 = vsel %vm66_vm2, 1.0, %v58_v2  ;;  %v47_v17 = vld [vmem:[#allocation2] sm:$0xff]  ;;  %v48_v19 = vld [vmem:[#allocation2 + $0x8] sm:$0xff] }
  0x10   :  { %vm70_vm6 = vcmp.eq.f32.partialorder %v309_v6, 0.0  ;;  %v75_v11 = vsel %vm67_vm3, 1.0, %v59_v3  ;;  %185 = vlog2.f32 %v72_v7  ;;  %vm71_vm7 = vcmp.eq.f32.partialorder %v311_v8, 0.0  ;;  %v49_v22 = vld [vmem:[#allocation2 + $0x10] sm:$0xff]  ;;  %v50_v25 = vld [vmem:[#allocation2 + $0x18] sm:$0xff]  ;;  %v51_v29 = vld [vmem:[#allocation2 + $0x20] sm:$0xff] }
  0x11   :  { %v76_v12 = vsel %vm68_vm4, 1.0, %v305_v4  ;;  %187 = vlog2.f32 %v73_v9  ;;  %v77_v13 = vsel %vm69_vm5, 1.0, %v307_v5  ;;  %v78_v14 = vsel %vm70_vm6, 1.0, %v309_v6  ;;  %v52_v33 = vld [vmem:[#allocation2 + $0x28] sm:$0xff]  ;;  %v53_v42 = vld [vmem:[#allocation2 + $0x30] sm:$0xff]  ;;  %v54_v50 = vld [vmem:[#allocation2 + $0x38] sm:$0xff] }
  0x12   :  { %189 = vlog2.f32 %v74_v10  ;;  %v79_v15 = vsel %vm71_vm7, 1.0, %v311_v8 }
  0x13   :  { %191 = vlog2.f32 %v75_v11 }
  0x14   :  { %193 = vlog2.f32 %v76_v12 }
  0x15   :  { %195 = vlog2.f32 %v77_v13 }
  0x16   :  { %v186_v16 = vpop.eup %185  ;;  %197 = vlog2.f32 %v78_v14 }
  0x17   :  { %v188_v18 = vpop.eup %187  ;;  %v81_v20 = vmul.f32 0.6931472, %v186_v16  ;;  %199 = vlog2.f32 %v79_v15 }
  0x18   :  { %v190_v21 = vpop.eup %189  ;;  %v83_v23 = vmul.f32 0.6931472, %v188_v18 }
  0x19   :  { %v192_v24 = vpop.eup %191  ;;  %v85_v26 = vmul.f32 0.6931472, %v190_v21  ;;  %v96_v27 = vsub.f32 %v81_v20, %v47_v17 }
  0x1a   :  { %v194_v28 = vpop.eup %193  ;;  %v87_v30 = vmul.f32 0.6931472, %v192_v24  ;;  %v97_v31 = vsub.f32 %v83_v23, %v48_v19 }
  0x1b   :  { %v196_v32 = vpop.eup %195  ;;  %v89_v34 = vmul.f32 0.6931472, %v194_v28  ;;  %v98_v35 = vsub.f32 %v85_v26, %v49_v22  ;;  %v104_v36 = vmul.f32 %v96_v27, %v56_v0 }
  0x1c   :  { %v198_v37 = vpop.eup %197  ;;  %v91_v38 = vmul.f32 0.6931472, %v196_v32  ;;  %v99_v39 = vsub.f32 %v87_v30, %v50_v25  ;;  %v105_v40 = vmul.f32 %v97_v31, %v57_v1 }
  0x1d   :  { %v200_v41 = vpop.eup %199  ;;  %v93_v43 = vmul.f32 0.6931472, %v198_v37  ;;  %v100_v44 = vsub.f32 %v89_v34, %v51_v29  ;;  %v106_v45 = vmul.f32 %v98_v35, %v58_v2 }
  0x1e   :  { %v95_v46 = vmul.f32 0.6931472, %v200_v41  ;;  %v101_v47 = vsub.f32 %v91_v38, %v52_v33  ;;  %v107_v48 = vmul.f32 %v99_v39, %v59_v3  ;;  %v153_v49 = vadd.f32 %v105_v40, %v104_v36 }
  0x1f   :  { %v102_v51 = vsub.f32 %v93_v43, %v53_v42  ;;  %v108_v52 = vmul.f32 %v100_v44, %v305_v4 }
  0x20   :  { %v154_v53 = vadd.f32 %v153_v49, %v106_v45  ;;  %v103_v54 = vsub.f32 %v95_v46, %v54_v50  ;;  %v109_v55 = vmul.f32 %v101_v47, %v307_v5 }
  0x21   :  { %v110_v57 = vmul.f32 %v102_v51, %v309_v6 }
  0x22   :  { %v155_v56 = vadd.f32 %v154_v53, %v107_v48  ;;  %v111_v59 = vmul.f32 %v103_v54, %v311_v8 }
  0x24   :  { %v156_v58 = vadd.f32 %v155_v56, %v108_v52 }
  0x26   :  { %v157_v60 = vadd.f32 %v156_v58, %v109_v55 }
  0x28   :  { %v158_v61 = vadd.f32 %v157_v60, %v110_v57 }
  0x2a   :  { %v159_v62 = vadd.f32 %v158_v61, %v111_v59 }
  0x2c   :  { %161 = vst [vmem:[#allocation7] sm:$0xff] %v159_v62 }
  0x2d   :  { %172 = dma.vmem_to_hbm [thread:$0]  %s168_s1, 128, %s170_s23, [#allocation4]  }
  0x2e   :  { %277 = dma.done.wait [#allocation4], 128  }
  0x2f   :  { %278 = vsyncadd [#allocation4], 4294967168 }
  0x30   :  { %177 = vsyncpa [#allocation3], 1 }
  0x31   :  { %178 = vsyncpa [#allocation6], 1 }
  0x32   :  { %179 = vsyncpa [#allocation4], 1 }

</bundles_post_ra>
